<compile_context>
chip_gen: v6e
topology: v6e:2x2x1
jax: 0.10.0
libtpu: 0.0.40
codegen_flags: <defaults>
</compile_context>

<pallas_src>
import functools

import jax
import jax.numpy as jnp
from jax.experimental import pallas as pl
from jax.experimental.pallas import tpu as pltpu


def _round_up(x, m):
    return ((x + m - 1) // m) * m


def _vmem_limit_bytes():
    """Gen-gated scoped-VMEM limit: ~half of physical, capped at 64 MiB."""
    try:
        info = pltpu.get_tpu_info()
        cap = getattr(info, "vmem_capacity_bytes", None)
        if cap:
            return int(min(64 * 1024 * 1024, max(32 * 1024 * 1024, cap // 2)))
    except Exception:
        pass
    return 32 * 1024 * 1024


def _lora_linear_kernel(x_ref, w_ref, xa_ref, b_ref, o_ref, acc_ref):
    # x_ref: (tm, tk)  w_ref: (tk, tn)  xa_ref: (tm, rp)  b_ref: (rp, tn)
    # o_ref: (tm, tn) bf16   acc_ref: (tm, tn) f32
    k = pl.program_id(2)
    nk = pl.num_programs(2)

    @pl.when(k == 0)
    def _init():
        acc_ref[...] = jnp.zeros_like(acc_ref)

    # Base path: bf16 x bf16 -> f32 accumulation on the MXU.
    acc_ref[...] += jnp.dot(x_ref[...], w_ref[...],
                            preferred_element_type=jnp.float32)

    @pl.when(k == nk - 1)
    def _finalize():
        # LoRA contribution: x@A (prescaled, hoisted to the wrapper) @ B.
        lora = jnp.dot(xa_ref[...], b_ref[...],
                       preferred_element_type=jnp.float32)
        o_ref[...] = (acc_ref[...] + lora).astype(o_ref.dtype)


def lora_linear_prepadded(x, wp, ap, bp, scaling, *, out_features,
                          tm=512, tn=1024, tk=1024):
    """x: (M, H) any float dtype; wp: (hp, op), ap: (hp, rp), bp: (rp, op)
    are bf16, already zero-padded to tile multiples (hp % tk == 0,
    op % tn == 0, rp a multiple of 128).  Returns (M, out_features) bf16."""
    M, H = x.shape
    hp, op = wp.shape
    rp = ap.shape[1]
    assert hp % tk == 0 and op % tn == 0

    # Clamp the M tile for small problems while keeping sublane alignment.
    tm = max(8, min(tm, _round_up(M, 8)))
    mp = _round_up(M, tm)

    cdt = jnp.bfloat16
    xp = jnp.pad(x.astype(cdt), ((0, mp - M), (0, hp - H)))

    # Hoisted LoRA "A" path: tiny (mp, rp) matmul in the wrapper; scaling is
    # folded into the intermediate so the kernel never touches it.  Deliberate
    # precision choice: cast the f32 intermediate to bf16 for the second MXU
    # matmul (mirrored in the reference below).
    xa = (scaling * jnp.dot(xp, ap,
                            preferred_element_type=jnp.float32)).astype(cdt)

    grid = (mp // tm, op // tn, hp // tk)

    # TODO(synk): if a profile shows exposed DMA at j/i tile rollover, add
    # pipeline_mode=pl.Buffered(3) on the W stream; on v7x, fp8 base weights
    # would further halve the dominant W stream.
    yp = pl.pallas_call(
        _lora_linear_kernel,
        out_shape=jax.ShapeDtypeStruct((mp, op), cdt),
        grid_spec=pltpu.PrefetchScalarGridSpec(
            num_scalar_prefetch=0,
            grid=grid,
            in_specs=[
                pl.BlockSpec((tm, tk), lambda i, j, k: (i, k)),   # x
                pl.BlockSpec((tk, tn), lambda i, j, k: (k, j)),   # W
                pl.BlockSpec((tm, rp), lambda i, j, k: (i, 0)),   # scaled x@A
                pl.BlockSpec((rp, tn), lambda i, j, k: (0, j)),   # B
            ],
            out_specs=pl.BlockSpec((tm, tn), lambda i, j, k: (i, j)),
            scratch_shapes=[
                pltpu.VMEM((tm, tn), jnp.float32),   # base-matmul accumulator
            ],
        ),
        compiler_params=pltpu.CompilerParams(
            # No cross-j state anymore, so both M and N shard across cores
            # (v7x megacore); K is the reduction axis (output block resident).
            dimension_semantics=("parallel", "parallel", "arbitrary"),
            vmem_limit_bytes=_vmem_limit_bytes(),
        ),
    )(xp, wp, xa, bp)

    return yp[:M, :out_features]


class PeftLoraForward:
    """Minimal JAX/Pallas analogue of PeftModel.forward for a LoRA config:
    forward(x) -> base_model.model(x), where the adapted layer is a LoRA
    linear.  Frozen weights are pre-cast to bf16 and tile-padded once here."""

    def __init__(self, key, hidden=32, out_features=32, r=8, lora_alpha=16,
                 tm=512, tn=1024, tk=1024):
        k_w, k_a = jax.random.split(key)
        self.hidden = hidden
        self.out_features = out_features

        # Base weight (frozen), stored pre-transposed as (in, out)
        # (PyTorch nn.Linear stores (out, in)).
        self.w = jax.random.normal(k_w, (hidden, out_features),
                                   jnp.float32) / jnp.sqrt(hidden)
        # LoRA A ~ kaiming-ish init.
        self.a = jax.random.normal(k_a, (hidden, r),
                                   jnp.float32) / jnp.sqrt(hidden)
        # TODO(synk): real LoRA init keeps B=0 so the adapter is a no-op at
        # step 0; give B small deterministic values so the LoRA path is
        # actually exercised by the test below.
        self.b = 0.01 * jnp.arange(r * out_features,
                                   dtype=jnp.float32).reshape(
                                       r, out_features) / (r * out_features)
        self.scaling = lora_alpha / r

        # Tile selection that only depends on the layer geometry.
        self._tm = tm
        self._tn = min(tn, _round_up(out_features, 128))
        self._tk = min(tk, _round_up(hidden, 128))
        rp = _round_up(r, 128)
        hp = _round_up(hidden, self._tk)
        op = _round_up(out_features, self._tn)

        # One-time bf16 cast + zero-pad of the frozen weights (padding is
        # mathematically inert; padded output cols are sliced off).
        cdt = jnp.bfloat16
        self.wp = jnp.pad(self.w.astype(cdt), ((0, hp - hidden),
                                               (0, op - out_features)))
        self.ap = jnp.pad(self.a.astype(cdt), ((0, hp - hidden), (0, rp - r)))
        self.bp = jnp.pad(self.b.astype(cdt), ((0, rp - r),
                                               (0, op - out_features)))

    def __call__(self, x):
        # x: (batch, seq, hidden) -> (batch, seq, out_features) in bf16.
        batch, seq, hidden = x.shape
        x2 = x.reshape(batch * seq, hidden)
        y2 = lora_linear_prepadded(x2, self.wp, self.ap, self.bp, self.scaling,
                                   out_features=self.out_features,
                                   tm=self._tm, tn=self._tn, tk=self._tk)
        return y2.reshape(batch, seq, -1)


def _reference(model, x):
    """Plain-JAX reference mirroring the kernel's bf16-operand / f32-accum /
    bf16-output math."""
    batch, seq, hidden = x.shape
    f32 = jnp.float32
    x2 = x.reshape(batch * seq, hidden).astype(jnp.bfloat16).astype(f32)
    wb = model.w.astype(jnp.bfloat16).astype(f32)
    ab = model.a.astype(jnp.bfloat16).astype(f32)
    bb = model.b.astype(jnp.bfloat16).astype(f32)
    xa = (model.scaling * (x2 @ ab)).astype(jnp.bfloat16).astype(f32)
    y = (x2 @ wb + xa @ bb).astype(jnp.bfloat16).astype(f32)
    return y.reshape(batch, seq, -1)


if __name__ == "__main__":
    key = jax.random.PRNGKey(0)
    k_model, k_x1, k_x2 = jax.random.split(key, 3)

    batch, seq, hidden = 2, 8, 32
    model = PeftLoraForward(k_model, hidden=hidden, out_features=32, r=8,
                            lora_alpha=16)

    # Case 1: nominal small shape.
    x = jax.random.normal(k_x1, (batch, seq, hidden), jnp.float32)
    y = model(x)
    jax.block_until_ready(y)
    ref = _reference(model, x)
    assert jnp.allclose(y.astype(jnp.float32), ref, atol=2e-2, rtol=2e-2), \
        "mismatch vs reference"

    # Case 2: ragged M (batch*seq not a multiple of the sublane/tile) to
    # exercise the padding path.
    x2 = jax.random.normal(k_x2, (batch, 7, hidden), jnp.float32)
    y2 = model(x2)
    jax.block_until_ready(y2)
    ref2 = _reference(model, x2)
    assert jnp.allclose(y2.astype(jnp.float32), ref2, atol=2e-2, rtol=2e-2), \
        "mismatch (ragged M)"

    print("KERNEL_OK")
</pallas_src>

<mosaic_0001>
module attributes {stable_mosaic.version = 11 : i64} {
  func.func @_lora_linear_kernel(%arg0: i32, %arg1: i32, %arg2: i32, %arg3: memref<16x128xbf16, #tpu.memory_space<vmem>>, %arg4: memref<128x128xbf16, #tpu.memory_space<vmem>>, %arg5: memref<16x128xbf16, #tpu.memory_space<vmem>>, %arg6: memref<128x128xbf16, #tpu.memory_space<vmem>>, %arg7: memref<16x128xbf16, #tpu.memory_space<vmem>>, %arg8: memref<16x128xf32, #tpu.memory_space<vmem>>) attributes {dimension_semantics = [#tpu.dimension_semantics<parallel>, #tpu.dimension_semantics<parallel>, #tpu.dimension_semantics<arbitrary>], iteration_bounds = array<i64: 1, 1, 1>, scalar_prefetch = 0 : i64, scratch_operands = 1 : i64, tpu.core_type = #tpu.core_type<tc>, window_params = [{transform_indices = @transform_0, window_bounds = array<i64: 16, 128>}, {transform_indices = @transform_1, window_bounds = array<i64: 128, 128>}, {transform_indices = @transform_2, window_bounds = array<i64: 16, 128>}, {transform_indices = @transform_3, window_bounds = array<i64: 128, 128>}, {transform_indices = @transform_4, window_bounds = array<i64: 16, 128>}]} {
    %c0_i32 = arith.constant 0 : i32
    %0 = arith.cmpi eq, %arg2, %c0_i32 : i32
    %1 = arith.extui %0 : i1 to i32
    %c0_i32_0 = arith.constant 0 : i32
    %2 = arith.cmpi ne, %1, %c0_i32_0 : i32
    scf.if %2 {
      %cst_10 = arith.constant 0.000000e+00 : f32
      %12 = vector.broadcast %cst_10 : f32 to vector<16x128xf32>
      %c0_11 = arith.constant 0 : index
      %c0_12 = arith.constant 0 : index
      %13 = vector.load %arg8[%c0_11, %c0_12] : memref<16x128xf32, #tpu.memory_space<vmem>>, vector<16x128xf32>
      tpu.vector_store %arg8[%c0_11, %c0_12], %12 {strides = array<i32>} : memref<16x128xf32, #tpu.memory_space<vmem>>, vector<16x128xf32>,
    } else {
    }
    %c0 = arith.constant 0 : index
    %c0_1 = arith.constant 0 : index
    %3 = vector.load %arg8[%c0, %c0_1] : memref<16x128xf32, #tpu.memory_space<vmem>>, vector<16x128xf32>
    %c0_2 = arith.constant 0 : index
    %c0_3 = arith.constant 0 : index
    %4 = vector.load %arg3[%c0_2, %c0_3] : memref<16x128xbf16, #tpu.memory_space<vmem>>, vector<16x128xbf16>
    %c0_4 = arith.constant 0 : index
    %c0_5 = arith.constant 0 : index
    %5 = vector.load %arg4[%c0_4, %c0_5] : memref<128x128xbf16, #tpu.memory_space<vmem>>, vector<128x128xbf16>
    %cst = arith.constant dense<0.000000e+00> : vector<16x128xf32>
    %6 = tpu.matmul %4, %5, %cst {dimension_numbers = #tpu.dot_dimension_numbers<[1], [0], [0], [1], [0, 0, 1, 1], [], []>} : vector<16x128xbf16>, vector<128x128xbf16>, vector<16x128xf32> -> vector<16x128xf32>
    %7 = arith.addf %3, %6 : vector<16x128xf32>
    %c0_6 = arith.constant 0 : index
    %c0_7 = arith.constant 0 : index
    %8 = vector.load %arg8[%c0_6, %c0_7] : memref<16x128xf32, #tpu.memory_space<vmem>>, vector<16x128xf32>
    tpu.vector_store %arg8[%c0_6, %c0_7], %7 {strides = array<i32>} : memref<16x128xf32, #tpu.memory_space<vmem>>, vector<16x128xf32>,
    %c0_i32_8 = arith.constant 0 : i32
    %9 = arith.cmpi eq, %arg2, %c0_i32_8 : i32
    %10 = arith.extui %9 : i1 to i32
    %c0_i32_9 = arith.constant 0 : i32
    %11 = arith.cmpi ne, %10, %c0_i32_9 : i32
    scf.if %11 {
      %c0_10 = arith.constant 0 : index
      %c0_11 = arith.constant 0 : index
      %12 = vector.load %arg5[%c0_10, %c0_11] : memref<16x128xbf16, #tpu.memory_space<vmem>>, vector<16x128xbf16>
      %c0_12 = arith.constant 0 : index
      %c0_13 = arith.constant 0 : index
      %13 = vector.load %arg6[%c0_12, %c0_13] : memref<128x128xbf16, #tpu.memory_space<vmem>>, vector<128x128xbf16>
      %cst_14 = arith.constant dense<0.000000e+00> : vector<16x128xf32>
      %14 = tpu.matmul %12, %13, %cst_14 {dimension_numbers = #tpu.dot_dimension_numbers<[1], [0], [0], [1], [0, 0, 1, 1], [], []>} : vector<16x128xbf16>, vector<128x128xbf16>, vector<16x128xf32> -> vector<16x128xf32>
      %c0_15 = arith.constant 0 : index
      %c0_16 = arith.constant 0 : index
      %15 = vector.load %arg8[%c0_15, %c0_16] : memref<16x128xf32, #tpu.memory_space<vmem>>, vector<16x128xf32>
      %16 = arith.addf %15, %14 : vector<16x128xf32>
      %17 = arith.truncf %16 : vector<16x128xf32> to vector<16x128xbf16>
      %c0_17 = arith.constant 0 : index
      %c0_18 = arith.constant 0 : index
      %18 = vector.load %arg7[%c0_17, %c0_18] : memref<16x128xbf16, #tpu.memory_space<vmem>>, vector<16x128xbf16>
      tpu.vector_store %arg7[%c0_17, %c0_18], %17 {strides = array<i32>} : memref<16x128xbf16, #tpu.memory_space<vmem>>, vector<16x128xbf16>,
    } else {
    }
    return
  }
  func.func @transform_0(%arg0: i32, %arg1: i32, %arg2: i32) -> (i32, i32) {
    %c0_i32 = arith.constant 0 : i32
    return %arg0, %arg2 : i32, i32
  }
  func.func @transform_1(%arg0: i32, %arg1: i32, %arg2: i32) -> (i32, i32) {
    %c0_i32 = arith.constant 0 : i32
    return %arg2, %arg1 : i32, i32
  }
  func.func @transform_2(%arg0: i32, %arg1: i32, %arg2: i32) -> (i32, i32) {
    %c0_i32 = arith.constant 0 : i32
    %c0_i32_0 = arith.constant 0 : i32
    return %arg0, %c0_i32 : i32, i32
  }
  func.func @transform_3(%arg0: i32, %arg1: i32, %arg2: i32) -> (i32, i32) {
    %c0_i32 = arith.constant 0 : i32
    %c0_i32_0 = arith.constant 0 : i32
    return %c0_i32, %arg1 : i32, i32
  }
  func.func @transform_4(%arg0: i32, %arg1: i32, %arg2: i32) -> (i32, i32) {
    %c0_i32 = arith.constant 0 : i32
    return %arg0, %arg1 : i32, i32
  }
}

</mosaic_0001>

<bundles_post_ra>
// kernel: tpu_custom_call.1
= control target key start
LH: loop header
LB: loop body
LE: loop exit
PB: predicated region body
PF: predicated region fallthrough
CT: control target
= control target key end

     0   :  { %9 = vsyncpa [#allocation4], 0  ;;  %s632_s0 = inlined_call_operand.hbm [shape: bf16[16,128], index: 0, kind: input, shape index: {}]   ;;  %s633_s1 = inlined_call_operand.hbm [shape: bf16[128,128], index: 1, kind: input, shape index: {}]   ;;  %s634_s2 = inlined_call_operand.hbm [shape: bf16[16,128], index: 2, kind: input, shape index: {}]   ;;  %s635_s3 = inlined_call_operand.hbm [shape: bf16[128,128], index: 3, kind: input, shape index: {}]   ;;  %s636_s4 = inlined_call_operand.hbm [shape: bf16[16,128], index: 4, kind: output, shape index: {}]  }
   0x1   :  { %10 = vsyncpa [#allocation7], 0 }
   0x2   :  { %11 = vsyncpa [#allocation10], 0 }
   0x3   :  { %12 = vsyncpa [#allocation5], 0  ;;  %s568_s15 = smov [#allocation6]   ;;  %s569_s17 = smov [#allocation3]  }
   0x4   :  { %s30_s16 = sshll.u32 %s568_s15, 4  ;;  %s18_s18 = sshll.u32 %s569_s17, 4  ;;  %s31_s16 = int_to_ptr.vmem [resolvable:$true] %s30_s16  ;;  %s19_s18 = int_to_ptr.vmem [resolvable:$true] %s18_s18 }
   0x5   :  { %s468_s19 = scalar_lea.vmem %s31_s16, 1024  ;;  %p473_p1 = scmp.lt.s32.totalorder %s31_s16, %s31_s16 }
   0x6   :  { %p469_p0 = scmp.ne.s32.totalorder %s31_s16, %s468_s19  ;;  %p474_p2 = scmp.lt.s32.totalorder %s468_s19, %s468_s19 }
   0x8   :  { %p475_p3 = por %p474_p2, %p473_p1 }
   0xa   :  { %p476_p4 = pnand %p475_p3, %p469_p0 }
   0xc   :  { %479 = shalt.err (!%p476_p4)
}
   0xd   :  { %s570_s20 = smov 64   ;;  %s571_s21 = smov 4  }
   0xe   :  { %36 = dma.hbm_to_vmem [thread:$0]  %s633_s1, 1024, %s31_s16, [#allocation7], %s570_s20, %s570_s20, %s571_s21  }
   0xf   :  { %s488_s24 = scalar_lea.vmem %s19_s18, 128  ;;  %p493_p6 = scmp.lt.s32.totalorder %s19_s18, %s19_s18 }
  0x10   :  { %p489_p5 = scmp.ne.s32.totalorder %s19_s18, %s488_s24  ;;  %p494_p7 = scmp.lt.s32.totalorder %s488_s24, %s488_s24 }
  0x12   :  { %p495_p8 = por %p494_p7, %p493_p6 }
  0x14   :  { %p496_p9 = pnand %p495_p8, %p489_p5 }
  0x16   :  { %499 = shalt.err (!%p496_p9)
}
  0x17   :  { %24 = dma.hbm_to_vmem [thread:$0]  %s632_s0, 128, %s19_s18, [#allocation4], %s570_s20, %s570_s20, %s571_s21  }
  0x18   :  { %s572_s27 = smov [#allocation8]   ;;  %s573_s29 = smov [#allocation9]  }
  0x19   :  { %s42_s28 = sshll.u32 %s572_s27, 4  ;;  %s54_s30 = sshll.u32 %s573_s29, 4  ;;  %s43_s28 = int_to_ptr.vmem [resolvable:$true] %s42_s28  ;;  %s55_s30 = int_to_ptr.vmem [resolvable:$true] %s54_s30 }
  0x1a   :  { %s508_s1 = scalar_lea.vmem %s43_s28, 128  ;;  %p513_p11 = scmp.lt.s32.totalorder %s43_s28, %s43_s28 }
  0x1b   :  { %p509_p10 = scmp.ne.s32.totalorder %s43_s28, %s508_s1  ;;  %p514_p12 = scmp.lt.s32.totalorder %s508_s1, %s508_s1 }
  0x1d   :  { %p515_p13 = por %p514_p12, %p513_p11 }
  0x1f   :  { %p516_p0 = pnand %p515_p13, %p509_p10 }
  0x21   :  { %519 = shalt.err (!%p516_p0)
}
  0x22   :  { %48 = dma.hbm_to_vmem [thread:$0]  %s634_s2, 128, %s43_s28, [#allocation7], %s570_s20, %s570_s20, %s571_s21  }
  0x23   :  { %s528_s0 = scalar_lea.vmem %s55_s30, 1024  ;;  %p533_p2 = scmp.lt.s32.totalorder %s55_s30, %s55_s30 }
  0x24   :  { %p529_p1 = scmp.ne.s32.totalorder %s55_s30, %s528_s0  ;;  %p534_p3 = scmp.lt.s32.totalorder %s528_s0, %s528_s0 }
  0x26   :  { %p535_p4 = por %p534_p3, %p533_p2 }
  0x28   :  { %p536_p5 = pnand %p535_p4, %p529_p1 }
  0x2a   :  { %539 = shalt.err (!%p536_p5)
}
  0x2b   :  { %60 = dma.hbm_to_vmem [thread:$0]  %s635_s3, 1024, %s55_s30, [#allocation10], %s570_s20, %s570_s20, %s571_s21  }
  0x2c   :  { %560 = dma.done.wait [#allocation4], 128  }
  0x2d   :  { %561 = vsyncadd [#allocation4], 4294967168 }
  0x2e   :  { %562 = dma.done.wait [#allocation7], 1152  }
  0x2f   :  { %563 = vsyncadd [#allocation7], 4294966144 }
  0x30   :  { %564 = dma.done.wait [#allocation10], 1024  }
  0x31   :  { %565 = vsyncadd [#allocation10], 4294966272  ;;  %v574_v0 = vmov 0.0   ;;  %vm575_vm0 = vmmov 0   ;;  %v442_v1 = vld [vmem:[#allocation6 + $0x38] sm:$0xff]   ;;  %v443_v2 = vld [vmem:[#allocation9 + $0x38] sm:$0xff]  }
  0x32   :  { %393 = vmatprep.subr.bf16.mxu0 %v574_v0  ;;  %413 = vmatprep.subr.bf16.mxu1 %v574_v0  ;;  %v444_v3 = vld [vmem:[#allocation6 + $0x30] sm:$0xff]   ;;  %v445_v4 = vld [vmem:[#allocation9 + $0x30] sm:$0xff]   ;;  %v446_v5 = vld [vmem:[#allocation6 + $0x28] sm:$0xff]   ;;  %s576_s2 = smov [#allocation11]  }
  0x33   :  { %409 = vmatprep.mubr.msk.bf16.mxu0 %vm575_vm0, %v574_v0  ;;  %429 = vmatprep.mubr.msk.bf16.mxu1 %vm575_vm0, %v574_v0  ;;  %v447_v6 = vld [vmem:[#allocation9 + $0x28] sm:$0xff]   ;;  %v448_v7 = vld [vmem:[#allocation6 + $0x20] sm:$0xff]   ;;  %v449_v8 = vld [vmem:[#allocation9 + $0x20] sm:$0xff]   ;;  %s334_s3 = sshll.u32 %s576_s2, 4  ;;  %s335_s3 = int_to_ptr.vmem [resolvable:$true] %s334_s3 }
  0x34   :  { %394 = vmatpush3.bf16.msra.mxu0 %v442_v1  ;;  %414 = vmatpush3.bf16.msra.mxu1 %v443_v2  ;;  %v450_v9 = vld [vmem:[#allocation6 + $0x18] sm:$0xff]   ;;  %v451_v10 = vld [vmem:[#allocation9 + $0x18] sm:$0xff]   ;;  %v452_v11 = vld [vmem:[#allocation6 + $0x10] sm:$0xff]   ;;  %s540_s9 = scalar_lea.vmem %s335_s3, 128  ;;  %p545_p7 = scmp.lt.s32.totalorder %s335_s3, %s335_s3 }
  0x35   :  { %395 = vmatprep.subr.bf16.mxu0 %v574_v0  ;;  %415 = vmatprep.subr.bf16.mxu1 %v574_v0  ;;  %v453_v12 = vld [vmem:[#allocation9 + $0x10] sm:$0xff]   ;;  %v454_v13 = vld [vmem:[#allocation6 + $0x8] sm:$0xff]   ;;  %v455_v14 = vld [vmem:[#allocation9 + $0x8] sm:$0xff]   ;;  %p541_p6 = scmp.ne.s32.totalorder %s335_s3, %s540_s9  ;;  %p546_p8 = scmp.lt.s32.totalorder %s540_s9, %s540_s9 }
  0x36   :  { %v456_v15 = vld [vmem:[#allocation6] sm:$0xff]   ;;  %v457_v16 = vld [vmem:[#allocation9] sm:$0xff]   ;;  %v458_v17 = vld [vmem:[#allocation3] sm:$0xff]  }
  0x37   :  { %v459_v18 = vld [vmem:[#allocation8] sm:$0xff]   ;;  %p547_p9 = por %p546_p8, %p545_p7 }
  0x38   :  { %396 = vmatpush3.bf16.msra.mxu0 %v444_v3  ;;  %416 = vmatpush3.bf16.msra.mxu1 %v445_v4 }
  0x39   :  { %397 = vmatprep.subr.bf16.mxu0 %v574_v0  ;;  %417 = vmatprep.subr.bf16.mxu1 %v574_v0  ;;  %p548_p10 = pnand %p547_p9, %p541_p6 }
  0x3c   :  { %398 = vmatpush3.bf16.msra.mxu0 %v446_v5  ;;  %418 = vmatpush3.bf16.msra.mxu1 %v447_v6 }
  0x3d   :  { %399 = vmatprep.subr.bf16.mxu0 %v574_v0  ;;  %419 = vmatprep.subr.bf16.mxu1 %v574_v0 }
  0x40   :  { %400 = vmatpush3.bf16.msra.mxu0 %v448_v7  ;;  %420 = vmatpush3.bf16.msra.mxu1 %v449_v8 }
  0x41   :  { %401 = vmatprep.subr.bf16.mxu0 %v574_v0  ;;  %421 = vmatprep.subr.bf16.mxu1 %v574_v0 }
  0x44   :  { %402 = vmatpush3.bf16.msra.mxu0 %v450_v9  ;;  %422 = vmatpush3.bf16.msra.mxu1 %v451_v10 }
  0x45   :  { %403 = vmatprep.subr.bf16.mxu0 %v574_v0  ;;  %423 = vmatprep.subr.bf16.mxu1 %v574_v0 }
  0x48   :  { %404 = vmatpush3.bf16.msra.mxu0 %v452_v11  ;;  %424 = vmatpush3.bf16.msra.mxu1 %v453_v12 }
  0x49   :  { %405 = vmatprep.subr.bf16.mxu0 %v574_v0  ;;  %425 = vmatprep.subr.bf16.mxu1 %v574_v0 }
  0x4c   :  { %406 = vmatpush3.bf16.msra.mxu0 %v454_v13  ;;  %426 = vmatpush3.bf16.msra.mxu1 %v455_v14 }
  0x4d   :  { %407 = vmatprep.subr.bf16.mxu0 %v574_v0  ;;  %427 = vmatprep.subr.bf16.mxu1 %v574_v0 }
  0x50   :  { %408 = vmatpush3.bf16.msra.mxu0 %v456_v15  ;;  %428 = vmatpush3.bf16.msra.mxu1 %v457_v16 }
  0x53   :  { %410 = vmatmul.mubr.bf16.vlgmr.msra.gmra.mxu0 %v458_v17  ;;  %430 = vmatmul.mubr.bf16.vlgmr.msra.gmra.mxu1 %v459_v18 }
 0x113   :  { %v188_v19 = vpop.f32.mrf.mxu0  ;;  %v308_v20 = vpop.f32.mrf.mxu1 }
 0x114   :  { %v317_v25 = vadd.f32 %v308_v20, %v188_v19 }
 0x115   :  { %v411_v21 = vpop.f32.mrf.mxu0  ;;  %v431_v22 = vpop.f32.mrf.mxu1 }
 0x117   :  { %v191_v23 = vpop.f32.mrf.mxu0  ;;  %v311_v24 = vpop.f32.mrf.mxu1 }
 0x118   :  { %v318_v26 = vadd.f32 %v311_v24, %v191_v23 }
 0x119   :  { %v412_v27 = vpop.f32.mrf.mxu0  ;;  %v432_v28 = vpop.f32.mrf.mxu1 }
 0x11a   :  { %v373_v29 = vpack.c.bf16 %v318_v26, %v317_v25 }
 0x11c   :  { %374 = vst [vmem:[#allocation11] sm:$0xff] %v373_v29  }
 0x11d   :  { %551 = shalt.err (!%p548_p10)
}
 0x11e   :  { %340 = dma.vmem_to_hbm [thread:$0]  %s335_s3, 128, %s636_s4, [#allocation5], %s570_s20, %s570_s20, %s571_s21  }
 0x11f   :  { %566 = dma.done.wait [#allocation5], 128  }
 0x120   :  { %567 = vsyncadd [#allocation5], 4294967168 }
 0x121   :  { %344 = vsyncpa [#allocation4], 1 }
 0x122   :  { %345 = vsyncpa [#allocation7], 1 }
 0x123   :  { %346 = vsyncpa [#allocation10], 1 }
 0x124   :  { %347 = vsyncpa [#allocation5], 1 }

</bundles_post_ra>
